<compile_context>
chip_gen: v7x
topology: tpu7x:2x2x1
jax: 0.10.0
libtpu: 0.0.40
codegen_flags: <defaults>
</compile_context>

<pallas_src>
import jax
import jax.numpy as jnp
from jax import lax
from jax.experimental import pallas as pl
from jax.experimental.pallas import tpu as pltpu

R_COEF = 0.2989
G_COEF = 0.587
B_COEF = 0.114

_LANE = 128
_MAX_ELEMS_PER_STEP = 256 * 1024   # per-channel elems streamed per grid step (12 MiB f32 live)


def _round_up(x, m):
    return (x + m - 1) // m * m


def _cdiv(a, b):
    return -(-a // b)


def _make_kernel(Bb, tr, n_inner, rows_total, ragged):
    """Bake the static tiling parameters into the kernel body."""

    def kernel(pred_ref, gt_ref, out_ref, acc_ref):
        # pred_ref/gt_ref : (Bb, 3, tr, 128) VMEM tiles
        # out_ref         : (1, 1) SMEM partial sum for this (batch-group, outer) cell
        # acc_ref         : (8, 128) f32 VMEM accumulator (single vreg row-block)
        o = pl.program_id(1)
        i = pl.program_id(2)

        # Weighted channel-wise luminance difference; never materialize 6 planes.
        d = (pred_ref[:, 0].astype(jnp.float32)
             - gt_ref[:, 0].astype(jnp.float32)) * R_COEF
        d = d + (pred_ref[:, 1].astype(jnp.float32)
                 - gt_ref[:, 1].astype(jnp.float32)) * G_COEF
        d = d + (pred_ref[:, 2].astype(jnp.float32)
                 - gt_ref[:, 2].astype(jnp.float32)) * B_COEF
        # d: (Bb, tr, 128) f32

        if ragged:
            # Boundary block: rows past the image are unspecified garbage.
            # Zero them (before squaring) based on the global row-tile index.
            g = o * n_inner + i                       # global spatial-tile index
            valid_rows = rows_total - g * tr          # >= tr for all but the last tile
            row_id = lax.broadcasted_iota(jnp.int32, (Bb, tr, _LANE), 1)
            d = jnp.where(row_id < valid_rows, d, 0.0)

        sq = d * d

        if n_inner == 1:
            # No cross-step accumulation needed: reduce and write immediately.
            out_ref[0, 0] = jnp.sum(sq)
        else:
            @pl.when(i == 0)
            def _():
                acc_ref[...] = jnp.zeros_like(acc_ref)

            # Fold into one (8,128) vreg row-block: pure sublane-aligned VALU adds.
            acc_ref[...] += jnp.sum(sq.reshape(Bb * tr // 8, 8, _LANE), axis=0)

            # Single deferred cross-lane reduction per (batch-group, outer) cell.
            @pl.when(i == n_inner - 1)
            def _():
                out_ref[0, 0] = jnp.sum(acc_ref[...])

    return kernel


def luminance_loss(pred, gt, *, max_elems_per_step=_MAX_ELEMS_PER_STEP):
    """Pallas implementation of LuminanceLoss.forward (returns a scalar)."""
    assert pred.shape == gt.shape
    assert pred.dtype == gt.dtype
    B, C, H, W = pred.shape
    assert C == 3, "LuminanceLoss expects RGB (C == 3) inputs"
    itemsize = jnp.dtype(pred.dtype).itemsize
    assert itemsize in (2, 4), "supported input dtypes: float32 / bfloat16"
    min_row = 8 * (4 // itemsize)           # (8,128) f32 / (16,128) bf16 minimum tile rows

    hw = H * W
    hw128 = _round_up(hw, _LANE)
    R = hw128 // _LANE                      # 128-wide rows per channel plane

    def _prep(x):
        x = x.reshape(B, 3, hw)
        if hw128 != hw:
            # Rare ragged-lane case only: zero-pad (exact for the sum since both
            # inputs get identical zeros; we divide by the true count below).
            x = jnp.pad(x, ((0, 0), (0, 0), (0, hw128 - hw)))
        return x.reshape(B, 3, R, _LANE)    # zero-copy reshape when hw % 128 == 0

    max_tr = max(min_row, max_elems_per_step // _LANE)

    if R <= max_tr:
        # Small images: one step covers a whole channel plane (full-dim row block,
        # no alignment padding needed) and several batch elements are fused per
        # step to amortize per-step overhead.
        tr, n_inner, ragged = R, 1, False
        Bb = 1
        for d in range(B, 0, -1):
            if B % d == 0 and d * R <= max_tr:
                Bb = d
                break
        n_b, n_o = B // Bb, 1
    else:
        # Large images: fix the tile count first, then pick the smallest aligned
        # tile that covers the plane -> overshoot bounded by nt*min_row rows.
        Bb, n_b = 1, B
        R_up = _round_up(R, min_row)
        nt0 = _cdiv(R_up, max_tr)
        tr = _round_up(_cdiv(R_up, nt0), min_row)
        nt = _cdiv(R, tr)
        ragged = (R % tr) != 0
        # Dual-TC (v7x) split of the spatial reduction when batch can't fill both cores.
        n_o = 2 if (n_b == 1 and nt % 2 == 0) else 1
        n_inner = nt // n_o

    pred_r = _prep(pred)
    gt_r = _prep(gt)

    img_spec = pl.BlockSpec((Bb, 3, tr, _LANE),
                            lambda b, o, i: (b, 0, o * n_inner + i, 0))
    out_spec = pl.BlockSpec((1, 1), lambda b, o, i: (b, o),
                            memory_space=pltpu.SMEM)

    kernel = _make_kernel(Bb, tr, n_inner, R, ragged)

    cost = pl.CostEstimate(
        flops=10 * B * hw,                                       # ~10 VPU ops / pixel
        transcendentals=0,
        bytes_accessed=2 * B * 3 * R * _LANE * itemsize + n_b * n_o * 4,
    )

    partial = pl.pallas_call(
        kernel,
        out_shape=jax.ShapeDtypeStruct((n_b, n_o), jnp.float32),
        grid_spec=pltpu.PrefetchScalarGridSpec(
            num_scalar_prefetch=0,
            grid=(n_b, n_o, n_inner),
            in_specs=[img_spec, img_spec],
            out_specs=out_spec,
            scratch_shapes=[pltpu.VMEM((8, _LANE), jnp.float32)],
        ),
        compiler_params=pltpu.CompilerParams(
            dimension_semantics=("parallel", "parallel", "arbitrary"),
            vmem_limit_bytes=32 << 20,     # explicit: fits v5e/v6e/v7x scoped VMEM
        ),
        cost_estimate=cost,
    )(pred_r, gt_r)

    # Combine partial sums outside the kernel; divide by the true element count.
    return jnp.sum(partial) / jnp.float32(B * hw)


def _reference(pred, gt):
    pred = pred.astype(jnp.float32)
    gt = gt.astype(jnp.float32)
    pred_lum = R_COEF * pred[:, 0] + G_COEF * pred[:, 1] + B_COEF * pred[:, 2]
    gt_lum = R_COEF * gt[:, 0] + G_COEF * gt[:, 1] + B_COEF * gt[:, 2]
    return jnp.mean((pred_lum - gt_lum) ** 2)


def _check(pred, gt, *, rtol=1e-5, atol=1e-6, **kwargs):
    loss = luminance_loss(pred, gt, **kwargs)
    jax.block_until_ready(loss)
    ref = _reference(pred, gt)
    assert jnp.allclose(loss, ref, rtol=rtol, atol=atol), (loss, ref)


if __name__ == "__main__":
    key = jax.random.PRNGKey(0)

    # Test 1: small spec-sized input -> single-step path with batch fusing.
    k1, k2 = jax.random.split(key)
    pred = jax.random.uniform(k1, (2, 3, 16, 16), dtype=jnp.float32)
    gt = jax.random.uniform(k2, (2, 3, 16, 16), dtype=jnp.float32)
    _check(pred, gt)

    # Test 2: multi-tile accumulation + ragged last tile handled by in-kernel mask
    #         (no jnp.pad: 40*32 = 1280 = 10 rows of 128, tile = 8 rows).
    k3, k4 = jax.random.split(k2)
    pred2 = jax.random.uniform(k3, (2, 3, 40, 32), dtype=jnp.float32)
    gt2 = jax.random.uniform(k4, (2, 3, 40, 32), dtype=jnp.float32)
    _check(pred2, gt2, max_elems_per_step=1024)

    # Test 3: B == 1 -> spatial reduction split over the second parallel axis
    #         (dual-TensorCore path on v7x; harmless elsewhere).
    k5, k6 = jax.random.split(k4)
    pred3 = jax.random.uniform(k5, (1, 3, 64, 64), dtype=jnp.float32)
    gt3 = jax.random.uniform(k6, (1, 3, 64, 64), dtype=jnp.float32)
    _check(pred3, gt3, max_elems_per_step=1024)

    # Test 4: H*W not a multiple of 128 -> rare zero-pad fallback path.
    k7, k8 = jax.random.split(k6)
    pred4 = jax.random.uniform(k7, (2, 3, 10, 10), dtype=jnp.float32)
    gt4 = jax.random.uniform(k8, (2, 3, 10, 10), dtype=jnp.float32)
    _check(pred4, gt4)

    # Test 5: bf16 inputs accepted (kernel upcasts to f32 for the math).
    k9, k10 = jax.random.split(k8)
    pred5 = jax.random.uniform(k9, (2, 3, 32, 64), dtype=jnp.float32).astype(jnp.bfloat16)
    gt5 = jax.random.uniform(k10, (2, 3, 32, 64), dtype=jnp.float32).astype(jnp.bfloat16)
    _check(pred5, gt5, rtol=1e-4, atol=1e-5)

    print("KERNEL_OK")
</pallas_src>

<mosaic_0001>
module attributes {stable_mosaic.version = 11 : i64} {
  func.func @kernel(%arg0: i32, %arg1: i32, %arg2: i32, %arg3: memref<2x3x2x128xf32, #tpu.memory_space<vmem>>, %arg4: memref<2x3x2x128xf32, #tpu.memory_space<vmem>>, %arg5: memref<1x1xf32, #tpu.memory_space<smem>>, %arg6: memref<8x128xf32, #tpu.memory_space<vmem>>) attributes {dimension_semantics = [#tpu.dimension_semantics<parallel>, #tpu.dimension_semantics<parallel>, #tpu.dimension_semantics<arbitrary>], iteration_bounds = array<i64: 1, 1, 1>, scalar_prefetch = 0 : i64, scratch_operands = 1 : i64, tpu.core_type = #tpu.core_type<tc>, window_params = [{transform_indices = @transform_0, window_bounds = array<i64: 2, 3, 2, 128>}, {transform_indices = @transform_1, window_bounds = array<i64: 2, 3, 2, 128>}, {transform_indices = @transform_2, window_bounds = array<i64: 1, 1>}]} {
    %c0 = arith.constant 0 : index
    %c0_0 = arith.constant 0 : index
    %c0_1 = arith.constant 0 : index
    %c0_2 = arith.constant 0 : index
    %0 = vector.load %arg3[%c0, %c0_0, %c0_1, %c0_2] : memref<2x3x2x128xf32, #tpu.memory_space<vmem>>, vector<2x1x2x128xf32>
    %1 = vector.shape_cast %0 : vector<2x1x2x128xf32> to vector<2x2x128xf32>
    %c0_3 = arith.constant 0 : index
    %c0_4 = arith.constant 0 : index
    %c0_5 = arith.constant 0 : index
    %c0_6 = arith.constant 0 : index
    %2 = vector.load %arg4[%c0_3, %c0_4, %c0_5, %c0_6] : memref<2x3x2x128xf32, #tpu.memory_space<vmem>>, vector<2x1x2x128xf32>
    %3 = vector.shape_cast %2 : vector<2x1x2x128xf32> to vector<2x2x128xf32>
    %4 = arith.subf %1, %3 : vector<2x2x128xf32>
    %cst = arith.constant 2.989000e-01 : f32
    %5 = vector.broadcast %cst : f32 to vector<2x2x128xf32>
    %6 = arith.mulf %4, %5 : vector<2x2x128xf32>
    %c0_7 = arith.constant 0 : index
    %c1 = arith.constant 1 : index
    %c0_8 = arith.constant 0 : index
    %c0_9 = arith.constant 0 : index
    %7 = vector.load %arg3[%c0_7, %c1, %c0_8, %c0_9] : memref<2x3x2x128xf32, #tpu.memory_space<vmem>>, vector<2x1x2x128xf32>
    %8 = vector.shape_cast %7 : vector<2x1x2x128xf32> to vector<2x2x128xf32>
    %c0_10 = arith.constant 0 : index
    %c1_11 = arith.constant 1 : index
    %c0_12 = arith.constant 0 : index
    %c0_13 = arith.constant 0 : index
    %9 = vector.load %arg4[%c0_10, %c1_11, %c0_12, %c0_13] : memref<2x3x2x128xf32, #tpu.memory_space<vmem>>, vector<2x1x2x128xf32>
    %10 = vector.shape_cast %9 : vector<2x1x2x128xf32> to vector<2x2x128xf32>
    %11 = arith.subf %8, %10 : vector<2x2x128xf32>
    %cst_14 = arith.constant 5.870000e-01 : f32
    %12 = vector.broadcast %cst_14 : f32 to vector<2x2x128xf32>
    %13 = arith.mulf %11, %12 : vector<2x2x128xf32>
    %14 = arith.addf %6, %13 : vector<2x2x128xf32>
    %c0_15 = arith.constant 0 : index
    %c2 = arith.constant 2 : index
    %c0_16 = arith.constant 0 : index
    %c0_17 = arith.constant 0 : index
    %15 = vector.load %arg3[%c0_15, %c2, %c0_16, %c0_17] : memref<2x3x2x128xf32, #tpu.memory_space<vmem>>, vector<2x1x2x128xf32>
    %16 = vector.shape_cast %15 : vector<2x1x2x128xf32> to vector<2x2x128xf32>
    %c0_18 = arith.constant 0 : index
    %c2_19 = arith.constant 2 : index
    %c0_20 = arith.constant 0 : index
    %c0_21 = arith.constant 0 : index
    %17 = vector.load %arg4[%c0_18, %c2_19, %c0_20, %c0_21] : memref<2x3x2x128xf32, #tpu.memory_space<vmem>>, vector<2x1x2x128xf32>
    %18 = vector.shape_cast %17 : vector<2x1x2x128xf32> to vector<2x2x128xf32>
    %19 = arith.subf %16, %18 : vector<2x2x128xf32>
    %cst_22 = arith.constant 1.140000e-01 : f32
    %20 = vector.broadcast %cst_22 : f32 to vector<2x2x128xf32>
    %21 = arith.mulf %19, %20 : vector<2x2x128xf32>
    %22 = arith.addf %14, %21 : vector<2x2x128xf32>
    %23 = arith.mulf %22, %22 : vector<2x2x128xf32>
    %24 = vector.shape_cast %23 : vector<2x2x128xf32> to vector<1x2x2x128xf32>
    %cst_23 = arith.constant dense<0.000000e+00> : vector<1xf32>
    %25 = vector.multi_reduction <add>, %24, %cst_23 [1, 2, 3] : vector<1x2x2x128xf32> to vector<1xf32>
    %26 = vector.shape_cast %25 : vector<1xf32> to vector<1x1x1x1xf32>
    %27 = vector.extract %26[0, 0, 0, 0] : f32 from vector<1x1x1x1xf32>
    %c0_24 = arith.constant 0 : index
    %c0_25 = arith.constant 0 : index
    %28 = memref.load %arg5[%c0_24, %c0_25] : memref<1x1xf32, #tpu.memory_space<smem>>
    memref.store %27, %arg5[%c0_24, %c0_25] : memref<1x1xf32, #tpu.memory_space<smem>>
    return
  }
  func.func @transform_0(%arg0: i32, %arg1: i32, %arg2: i32) -> (i32, i32, i32, i32) {
    %c1_i32 = arith.constant 1 : i32
    %0 = arith.muli %arg1, %c1_i32 : i32
    %1 = arith.addi %0, %arg2 : i32
    %c0_i32 = arith.constant 0 : i32
    %c0_i32_0 = arith.constant 0 : i32
    %c0_i32_1 = arith.constant 0 : i32
    return %arg0, %c0_i32, %1, %c0_i32_0 : i32, i32, i32, i32
  }
  func.func @transform_1(%arg0: i32, %arg1: i32, %arg2: i32) -> (i32, i32, i32, i32) {
    %c1_i32 = arith.constant 1 : i32
    %0 = arith.muli %arg1, %c1_i32 : i32
    %1 = arith.addi %0, %arg2 : i32
    %c0_i32 = arith.constant 0 : i32
    %c0_i32_0 = arith.constant 0 : i32
    %c0_i32_1 = arith.constant 0 : i32
    return %arg0, %c0_i32, %1, %c0_i32_0 : i32, i32, i32, i32
  }
  func.func @transform_2(%arg0: i32, %arg1: i32, %arg2: i32) -> (i32, i32) {
    %c0_i32 = arith.constant 0 : i32
    return %arg0, %arg1 : i32, i32
  }
}

</mosaic_0001>

<bundles_post_ra>
// kernel: tpu_custom_call.1
= control target key start
LH: loop header
LB: loop body
LE: loop exit
PB: predicated region body
PF: predicated region fallthrough
CT: control target
= control target key end

     0   :  { %7 = vsyncpa [#allocation4], 0  ;;  %s235_s0 = inlined_call_operand.hbm [shape: f32[2,3,2,128], index: 0, kind: input, shape index: {}]   ;;  %s236_s1 = inlined_call_operand.hbm [shape: f32[2,3,2,128], index: 1, kind: input, shape index: {}]   ;;  %s237_s2 = inlined_call_operand.hbm [shape: f32[1,1], index: 2, kind: output, shape index: {}]  }
   0x1   :  { %8 = vsyncpa [#allocation7], 0 }
   0x2   :  { %9 = vsyncpa [#allocation5], 0  ;;  %s179_s9 = smov [#allocation3]   ;;  %s119_s13 = scalar_lea.hbm %s235_s0, 192 }
   0x3   :  { %s18_s10 = sshll.u32 %s179_s9, 4  ;;  %p120_p0 = scmp.ne.s32.totalorder %s235_s0, %s119_s13  ;;  %s19_s10 = int_to_ptr.vmem [resolvable:$true] %s18_s10 }
   0x4   :  { %p123_p1 = scmp.lt.u32.totalorder %s119_s13, %s235_s0 }
   0x6   :  { %p125_p2 = pnand %p123_p1, %p120_p0 }
   0x8   :  { %128 = shalt.err (!%p125_p2)
}
   0x9   :  { %s129_s18 = scalar_lea.vmem %s19_s10, 192  ;;  %p134_p4 = scmp.lt.s32.totalorder %s19_s10, %s19_s10 }
   0xa   :  { %p130_p3 = scmp.ne.s32.totalorder %s19_s10, %s129_s18  ;;  %p135_p5 = scmp.lt.s32.totalorder %s129_s18, %s129_s18 }
   0xc   :  { %p136_p6 = por %p135_p5, %p134_p4 }
   0xe   :  { %p137_p7 = pnand %p136_p6, %p130_p3 }
  0x10   :  { %140 = shalt.err (!%p137_p7)
}
  0x11   :  { %s180_s19 = smov 32   ;;  %s181_s20 = smov 2  }
  0x12   :  { %24 = dma.hbm_to_vmem [thread:$0]  %s235_s0, 192, %s19_s10, [#allocation4], %s180_s19, %s180_s19, %s181_s20  }
  0x13   :  { %s182_s23 = smov [#allocation6]   ;;  %s141_s27 = scalar_lea.hbm %s236_s1, 192 }
  0x14   :  { %s33_s24 = sshll.u32 %s182_s23, 4  ;;  %p142_p8 = scmp.ne.s32.totalorder %s236_s1, %s141_s27  ;;  %s34_s24 = int_to_ptr.vmem [resolvable:$true] %s33_s24 }
  0x15   :  { %p145_p9 = scmp.lt.u32.totalorder %s141_s27, %s236_s1 }
  0x17   :  { %p147_p10 = pnand %p145_p9, %p142_p8 }
  0x19   :  { %150 = shalt.err (!%p147_p10)
}
  0x1a   :  { %s151_s4 = scalar_lea.vmem %s34_s24, 192  ;;  %p156_p12 = scmp.lt.s32.totalorder %s34_s24, %s34_s24 }
  0x1b   :  { %p152_p11 = scmp.ne.s32.totalorder %s34_s24, %s151_s4  ;;  %p157_p13 = scmp.lt.s32.totalorder %s151_s4, %s151_s4 }
  0x1d   :  { %p158_p0 = por %p157_p13, %p156_p12 }
  0x1f   :  { %p159_p1 = pnand %p158_p0, %p152_p11 }
  0x21   :  { %162 = shalt.err (!%p159_p1)
}
  0x22   :  { %39 = dma.hbm_to_vmem [thread:$0]  %s236_s1, 192, %s34_s24, [#allocation7], %s180_s19, %s180_s19, %s181_s20  }
  0x23   :  { %173 = dma.done.wait [#allocation4], 192  }
  0x24   :  { %174 = vsyncadd [#allocation4], 4294967104 }
  0x25   :  { %175 = dma.done.wait [#allocation7], 192  }
  0x26   :  { %176 = vsyncadd [#allocation7], 4294967104  ;;  %v48_v0 = vld [vmem:[#allocation3] sm:$0x3]  ;;  %v49_v1 = vld [vmem:[#allocation3 + $0x6] sm:$0x3] }
  0x27   :  { %v50_v2 = vld [vmem:[#allocation6] sm:$0x3]  ;;  %v51_v3 = vld [vmem:[#allocation6 + $0x6] sm:$0x3]  ;;  %v57_v5 = vld [vmem:[#allocation3 + $0x2] sm:$0x3] }
  0x28   :  { %v52_v4 = vsub.f32 %v48_v0, %v50_v2  ;;  %v58_v6 = vld [vmem:[#allocation3 + $0x8] sm:$0x3]  ;;  %v53_v7 = vsub.f32 %v49_v1, %v51_v3  ;;  %v60_v8 = vld [vmem:[#allocation6 + $0x2] sm:$0x3]  ;;  %v61_v9 = vld [vmem:[#allocation6 + $0x8] sm:$0x3] }
  0x29   :  { %v69_v10 = vld [vmem:[#allocation3 + $0x4] sm:$0x3]  ;;  %v62_v12 = vsub.f32 %v57_v5, %v60_v8  ;;  %v63_v13 = vsub.f32 %v58_v6, %v61_v9  ;;  %v70_v14 = vld [vmem:[#allocation3 + $0xa] sm:$0x3]  ;;  %v72_v15 = vld [vmem:[#allocation6 + $0x4] sm:$0x3] }
  0x2a   :  { %v54_v11 = vmul.f32 0.2989, %v52_v4  ;;  %v55_v16 = vmul.f32 0.2989, %v53_v7  ;;  %v73_v17 = vld [vmem:[#allocation6 + $0xa] sm:$0x3]  ;;  %v74_v18 = vsub.f32 %v69_v10, %v72_v15 }
  0x2b   :  { %v64_v19 = vmul.f32 0.587, %v62_v12  ;;  %v65_v20 = vmul.f32 0.587, %v63_v13  ;;  %v75_v21 = vsub.f32 %v70_v14, %v73_v17  ;;  %vm82_vm0 = vcmask 1041408   ;;  %s163_s8 = scalar_lea.hbm %s237_s2, 16 }
  0x2c   :  { %v76_v22 = vmul.f32 0.114, %v74_v18  ;;  %p164_p2 = scmp.ne.s32.totalorder %s237_s2, %s163_s8  ;;  %p167_p3 = scmp.lt.u32.totalorder %s163_s8, %s237_s2 }
  0x2d   :  { %v66_v23 = vadd.f32 %v64_v19, %v54_v11  ;;  %v67_v24 = vadd.f32 %v65_v20, %v55_v16  ;;  %v77_v25 = vmul.f32 0.114, %v75_v21 }
  0x2e   :  { %p169_p4 = pnand %p167_p3, %p164_p2 }
  0x2f   :  { %v78_v26 = vadd.f32 %v76_v22, %v66_v23  ;;  %v79_v27 = vadd.f32 %v77_v25, %v67_v24 }
  0x31   :  { %v80_v28 = vmul.f32 %v78_v26, %v78_v26  ;;  %v81_v29 = vmul.f32 %v79_v27, %v79_v27 }
  0x33   :  { %v83_v30 = vsel %vm82_vm0, %v80_v28, 0.0  ;;  %v84_v31 = vsel %vm82_vm0, %v81_v29, 0.0 }
  0x34   :  { %v85_v32 = vadd.f32 %v84_v31, %v83_v30 }
  0x36   :  { %86 = vadd.xlane.f32.xlu0 %v85_v32 }
  0xc3   :  { %v87_v33 = vpop.xlane.xlu0 %86 }
  0xc4   :  { %v88_v34 = vrot.slane %v87_v33, 4 }
  0xc6   :  { %v89_v35 = vadd.f32 %v88_v34, %v87_v33 }
  0xc8   :  { %v90_v36 = vrot.slane %v89_v35, 2 }
  0xca   :  { %v91_v37 = vadd.f32 %v90_v36, %v89_v35 }
  0xcc   :  { %v92_v38 = vrot.slane %v91_v37, 1 }
  0xce   :  { %v93_v39 = vadd.f32 %v92_v38, %v91_v37 }
  0xd0   :  { %112 = vpush %v93_v39 }
 0x101   :  { %s113_s1 = spop %112 }
 0x102   :  { %96 = sst [smem:[#allocation8]] %s113_s1 }
 0x103   :  { %172 = shalt.err (!%p169_p4)
}
 0x104   :  { %s183_s13 = smov [#allocation8]  }
 0x105   :  { %104 = dma.smem_to_hbm %s183_s13, 16, %s237_s2, [#allocation5]  }
 0x106   :  { %177 = dma.done.wait [#allocation5], 16  }
 0x107   :  { %178 = vsyncadd [#allocation5], 4294967280 }
 0x108   :  { %108 = sfence }
 0x109   :  { %109 = vsyncpa [#allocation4], 1 }
 0x10a   :  { %110 = vsyncpa [#allocation7], 1 }
 0x10b   :  { %111 = vsyncpa [#allocation5], 1 }

</bundles_post_ra>
